<compile_context>
chip_gen: v6e
topology: v6e:2x2x1
jax: 0.10.0
libtpu: 0.0.40
codegen_flags: <defaults>
</compile_context>

<pallas_src>
import jax
import jax.numpy as jnp
from jax.experimental import pallas as pl
from jax.experimental.pallas import tpu as pltpu


def _round_up(x, m):
    return (x + m - 1) // m * m


def _hw_config():
    """Return (vmem_budget_bytes, vmem_limit_bytes, k_align) for this TPU."""
    vmem_cap = None
    try:
        info = pltpu.get_tpu_info()
        cap = getattr(info, "vmem_capacity_bytes", None)
        if cap:
            vmem_cap = int(cap)
    except Exception:
        vmem_cap = None

    kind = ""
    try:
        kind = jax.devices()[0].device_kind.lower()
    except Exception:
        pass

    if vmem_cap is None:
        if "v7" in kind:
            vmem_cap = 64 * 1024 * 1024
        elif ("v5" in kind) or ("v6" in kind):
            vmem_cap = 128 * 1024 * 1024
        else:
            vmem_cap = 64 * 1024 * 1024            # conservative default

    # 128x128 MXU on <= v5; 256x256 on v6e/v7x.
    old_gen = any(g in kind for g in ("v2", "v3", "v4", "v5"))
    k_align = 128 if old_gen else 256

    budget = int(vmem_cap * 0.75)
    limit = int(vmem_cap * 0.85)
    return budget, limit, k_align


def _vmem_bytes(tile_m, tile_h, tile_n, in_p, x_item, w_item, o_item,
                acc_in_out):
    """Estimate peak VMEM for one grid step (double-buffered pipeline)."""
    x_buf = 2 * tile_m * in_p * x_item
    w1_buf = 2 * in_p * tile_h * w_item
    b1_buf = 2 * 8 * tile_h * 4               # (1, tile_h) pads to 8 sublanes
    w2_buf = 2 * tile_h * tile_n * w_item
    b2_buf = 2 * 8 * tile_n * 4
    o_buf = 2 * tile_m * tile_n * o_item
    acc = 0 if acc_in_out else tile_m * tile_n * 4
    # live f32 intermediate h + its low-precision cast copy for the 2nd matmul
    h_live = tile_m * tile_h * 4 + tile_m * tile_h * w_item
    mosaic_internal = 1 << 20
    return (x_buf + w1_buf + b1_buf + w2_buf + b2_buf + o_buf
            + acc + h_live + mosaic_internal)


def _ffn_kernel_acc_in_out(x_ref, w1_ref, b1_ref, w2_ref, b2_ref, o_ref):
    """f32 output: accumulate directly into the resident output block."""
    k = pl.program_id(2)

    @pl.when(k == 0)
    def _init():
        o_ref[...] = jnp.zeros_like(o_ref)

    h = jnp.dot(x_ref[...], w1_ref[...], preferred_element_type=jnp.float32)
    h = h + b1_ref[...]                       # b1 slice added once per k chunk
    # dropout (p=0.2) -> identity in eval mode
    o_ref[...] += jnp.dot(h.astype(w2_ref.dtype), w2_ref[...],
                          preferred_element_type=jnp.float32)

    @pl.when(k == pl.num_programs(2) - 1)
    def _finalize():
        o_ref[...] += b2_ref[...]


def _ffn_kernel_scratch(x_ref, w1_ref, b1_ref, w2_ref, b2_ref, o_ref, acc_ref):
    """Low-precision output: keep an f32 scratch accumulator, cast at the end."""
    k = pl.program_id(2)

    @pl.when(k == 0)
    def _init():
        acc_ref[...] = jnp.zeros_like(acc_ref)

    h = jnp.dot(x_ref[...], w1_ref[...], preferred_element_type=jnp.float32)
    h = h + b1_ref[...]
    # dropout (p=0.2) -> identity in eval mode
    acc_ref[...] += jnp.dot(h.astype(w2_ref.dtype), w2_ref[...],
                            preferred_element_type=jnp.float32)

    @pl.when(k == pl.num_programs(2) - 1)
    def _finalize():
        o_ref[...] = (acc_ref[...] + b2_ref[...]).astype(o_ref.dtype)


def ffn_pallas(x, w1, b1, w2, b2, *, tile_m=None, tile_h=None, tile_n=None,
               compute_dtype=jnp.bfloat16):
    """x: [M, in], w1: [in, h], b1: [h], w2: [h, out], b2: [out] -> [M, out]."""
    M, in_size = x.shape
    h_size = w1.shape[1]
    out_size = w2.shape[1]
    out_dtype = x.dtype

    budget, limit, k_align = _hw_config()

    if compute_dtype is not None:
        # bf16 MXU operands (native on v5e/v6e/v7x); accumulation stays f32.
        x = x.astype(compute_dtype)
        w1 = w1.astype(compute_dtype)
        w2 = w2.astype(compute_dtype)
    x_item = jnp.dtype(x.dtype).itemsize
    w_item = jnp.dtype(w1.dtype).itemsize
    o_item = jnp.dtype(out_dtype).itemsize

    # f32 outputs accumulate in-place in the output block (it is resident
    # across the innermost K axis), saving the scratch buffer entirely.
    acc_in_out = jnp.dtype(out_dtype) == jnp.dtype(jnp.float32)

    # Contraction dim of the first matmul: MXU-aligned.
    in_p = _round_up(in_size, k_align)

    # tile_m: largest sublane-aligned row tile <= 512 covering M.
    if tile_m is None:
        tile_m = min(512, _round_up(M, 8))
    tile_m = max(8, _round_up(tile_m, 8))

    # tile_h: hidden chunk (lanes of matmul 1, contraction of matmul 2).
    if tile_h is None:
        tile_h = min(_round_up(h_size, k_align), 1024)
    tile_h = max(k_align, _round_up(tile_h, k_align))
    tile_h = min(tile_h, _round_up(h_size, k_align))

    # tile_n: output lanes chunk.
    if tile_n is None:
        tile_n = min(_round_up(out_size, 128), 512)
    tile_n = max(128, _round_up(tile_n, 128))
    tile_n = min(tile_n, _round_up(out_size, 128))

    def fits(tm, th, tn):
        return _vmem_bytes(tm, th, tn, in_p, x_item, w_item, o_item,
                           acc_in_out) <= budget

    # Shrink to fit the generation-aware VMEM budget: hidden chunk first,
    # then output chunk, then rows.
    while not fits(tile_m, tile_h, tile_n) and tile_h > k_align:
        tile_h -= k_align
    while not fits(tile_m, tile_h, tile_n) and tile_n > 128:
        tile_n -= 128
    while not fits(tile_m, tile_h, tile_n) and tile_m > 8:
        tile_m = max(8, _round_up(tile_m // 2, 8))

    # Pad UP to tile multiples (zero padding contributes nothing numerically).
    h_p = _round_up(h_size, tile_h)
    out_p = _round_up(out_size, tile_n)
    m_p = _round_up(M, tile_m)

    if (m_p, in_p) != (M, in_size):
        x = jnp.pad(x, ((0, m_p - M), (0, in_p - in_size)))
    if (in_p, h_p) != (in_size, h_size):
        w1 = jnp.pad(w1, ((0, in_p - in_size), (0, h_p - h_size)))
    if (h_p, out_p) != (h_size, out_size):
        w2 = jnp.pad(w2, ((0, h_p - h_size), (0, out_p - out_size)))
    b1_2d = jnp.pad(b1, (0, h_p - h_size)).reshape(1, h_p).astype(jnp.float32)
    b2_2d = jnp.pad(b2, (0, out_p - out_size)).reshape(1, out_p).astype(jnp.float32)

    grid = (m_p // tile_m, out_p // tile_n, h_p // tile_h)   # (M, N, K)

    flops = 2 * m_p * in_p * h_p + 2 * m_p * h_p * out_p
    bytes_accessed = (m_p * in_p * x_item + in_p * h_p * w_item + h_p * 4
                      + h_p * out_p * w_item + out_p * 4
                      + m_p * out_p * o_item)

    if acc_in_out:
        kernel = _ffn_kernel_acc_in_out
        scratch_shapes = []
    else:
        kernel = _ffn_kernel_scratch
        scratch_shapes = [pltpu.VMEM((tile_m, tile_n), jnp.float32)]

    out = pl.pallas_call(
        kernel,
        out_shape=jax.ShapeDtypeStruct((m_p, out_p), out_dtype),
        grid_spec=pltpu.PrefetchScalarGridSpec(
            num_scalar_prefetch=0,
            grid=grid,
            in_specs=[
                pl.BlockSpec((tile_m, in_p), lambda i, j, k: (i, 0)),
                pl.BlockSpec((in_p, tile_h), lambda i, j, k: (0, k)),
                pl.BlockSpec((1, tile_h), lambda i, j, k: (0, k)),
                pl.BlockSpec((tile_h, tile_n), lambda i, j, k: (k, j)),
                pl.BlockSpec((1, tile_n), lambda i, j, k: (0, j)),
            ],
            out_specs=pl.BlockSpec((tile_m, tile_n), lambda i, j, k: (i, j)),
            scratch_shapes=scratch_shapes,
        ),
        compiler_params=pltpu.CompilerParams(
            dimension_semantics=("parallel", "parallel", "arbitrary"),
            vmem_limit_bytes=limit,
        ),
        cost_estimate=pl.CostEstimate(flops=flops, transcendentals=0,
                                      bytes_accessed=bytes_accessed),
    )(x, w1, b1_2d, w2, b2_2d)

    if (m_p, out_p) != (M, out_size):
        out = out[:M, :out_size]
    return out


if __name__ == "__main__":
    # shapes consistent with FFN(in_size, h_size, out_size) on [batch, seq, in]
    batch, seq = 2, 8
    in_size, h_size, out_size = 32, 64, 32
    M = batch * seq

    key = jax.random.PRNGKey(0)
    kx, k1, k2, k3, k4 = jax.random.split(key, 5)

    x = jax.random.normal(kx, (batch, seq, in_size), dtype=jnp.float32)

    # Deterministic PyTorch-style (uniform) init; stored pre-transposed.
    bound1 = 1.0 / (in_size ** 0.5)
    w1 = jax.random.uniform(k1, (in_size, h_size), jnp.float32, -bound1, bound1)
    b1 = jax.random.uniform(k2, (h_size,), jnp.float32, -bound1, bound1)
    bound2 = 1.0 / (h_size ** 0.5)
    w2 = jax.random.uniform(k3, (h_size, out_size), jnp.float32, -bound2, bound2)
    b2 = jax.random.uniform(k4, (out_size,), jnp.float32, -bound2, bound2)

    x2d = x.reshape(M, in_size)
    ref = (x2d @ w1 + b1) @ w2 + b2

    # Default path: bf16 MXU operands, f32 accumulation, f32 output in-place.
    out_default = ffn_pallas(x2d, w1, b1, w2, b2)
    jax.block_until_ready(out_default)
    assert out_default.shape == (M, out_size)
    assert jnp.allclose(out_default, ref, atol=5e-2, rtol=5e-2)

    # Full-f32 opt-out path (tight tolerance).
    out_f32 = ffn_pallas(x2d, w1, b1, w2, b2, compute_dtype=None)
    jax.block_until_ready(out_f32)
    assert jnp.allclose(out_f32, ref, atol=1e-5, rtol=1e-5)

    # Low-precision output path (exercises the f32 scratch-accumulator kernel).
    out_lp = ffn_pallas(x2d.astype(jnp.bfloat16), w1, b1, w2, b2)
    jax.block_until_ready(out_lp)
    assert out_lp.dtype == jnp.bfloat16
    assert jnp.allclose(out_lp.astype(jnp.float32), ref, atol=8e-2, rtol=8e-2)

    out3d = out_default.reshape(batch, seq, out_size)
    jax.block_until_ready(out3d)
    print("KERNEL_OK")
</pallas_src>

<mosaic_0001>
module attributes {stable_mosaic.version = 11 : i64} {
  func.func @_ffn_kernel_acc_in_out(%arg0: i32, %arg1: i32, %arg2: i32, %arg3: memref<16x256xbf16, #tpu.memory_space<vmem>>, %arg4: memref<256x256xbf16, #tpu.memory_space<vmem>>, %arg5: memref<1x256xf32, #tpu.memory_space<vmem>>, %arg6: memref<256x128xbf16, #tpu.memory_space<vmem>>, %arg7: memref<1x128xf32, #tpu.memory_space<vmem>>, %arg8: memref<16x128xf32, #tpu.memory_space<vmem>>) attributes {dimension_semantics = [#tpu.dimension_semantics<parallel>, #tpu.dimension_semantics<parallel>, #tpu.dimension_semantics<arbitrary>], iteration_bounds = array<i64: 1, 1, 1>, scalar_prefetch = 0 : i64, scratch_operands = 0 : i64, tpu.core_type = #tpu.core_type<tc>, window_params = [{transform_indices = @transform_0, window_bounds = array<i64: 16, 256>}, {transform_indices = @transform_1, window_bounds = array<i64: 256, 256>}, {transform_indices = @transform_2, window_bounds = array<i64: 1, 256>}, {transform_indices = @transform_3, window_bounds = array<i64: 256, 128>}, {transform_indices = @transform_4, window_bounds = array<i64: 1, 128>}, {transform_indices = @transform_5, window_bounds = array<i64: 16, 128>}]} {
    %c0_i32 = arith.constant 0 : i32
    %0 = arith.cmpi eq, %arg2, %c0_i32 : i32
    %1 = arith.extui %0 : i1 to i32
    %c0_i32_0 = arith.constant 0 : i32
    %2 = arith.cmpi ne, %1, %c0_i32_0 : i32
    scf.if %2 {
      %cst_15 = arith.constant 0.000000e+00 : f32
      %18 = vector.broadcast %cst_15 : f32 to vector<16x128xf32>
      %c0_16 = arith.constant 0 : index
      %c0_17 = arith.constant 0 : index
      %19 = vector.load %arg8[%c0_16, %c0_17] : memref<16x128xf32, #tpu.memory_space<vmem>>, vector<16x128xf32>
      tpu.vector_store %arg8[%c0_16, %c0_17], %18 {strides = array<i32>} : memref<16x128xf32, #tpu.memory_space<vmem>>, vector<16x128xf32>,
    } else {
    }
    %c0 = arith.constant 0 : index
    %c0_1 = arith.constant 0 : index
    %3 = vector.load %arg3[%c0, %c0_1] : memref<16x256xbf16, #tpu.memory_space<vmem>>, vector<16x256xbf16>
    %c0_2 = arith.constant 0 : index
    %c0_3 = arith.constant 0 : index
    %4 = vector.load %arg4[%c0_2, %c0_3] : memref<256x256xbf16, #tpu.memory_space<vmem>>, vector<256x256xbf16>
    %cst = arith.constant dense<0.000000e+00> : vector<16x256xf32>
    %5 = tpu.matmul %3, %4, %cst {dimension_numbers = #tpu.dot_dimension_numbers<[1], [0], [0], [1], [0, 0, 1, 1], [], []>} : vector<16x256xbf16>, vector<256x256xbf16>, vector<16x256xf32> -> vector<16x256xf32>
    %c0_4 = arith.constant 0 : index
    %c0_5 = arith.constant 0 : index
    %6 = vector.load %arg5[%c0_4, %c0_5] : memref<1x256xf32, #tpu.memory_space<vmem>>, vector<1x256xf32>
    %7 = vector.broadcast %6 : vector<1x256xf32> to vector<16x256xf32>
    %8 = arith.addf %5, %7 : vector<16x256xf32>
    %c0_6 = arith.constant 0 : index
    %c0_7 = arith.constant 0 : index
    %9 = vector.load %arg8[%c0_6, %c0_7] : memref<16x128xf32, #tpu.memory_space<vmem>>, vector<16x128xf32>
    %10 = arith.truncf %8 : vector<16x256xf32> to vector<16x256xbf16>
    %c0_8 = arith.constant 0 : index
    %c0_9 = arith.constant 0 : index
    %11 = vector.load %arg6[%c0_8, %c0_9] : memref<256x128xbf16, #tpu.memory_space<vmem>>, vector<256x128xbf16>
    %cst_10 = arith.constant dense<0.000000e+00> : vector<16x128xf32>
    %12 = tpu.matmul %10, %11, %cst_10 {dimension_numbers = #tpu.dot_dimension_numbers<[1], [0], [0], [1], [0, 0, 1, 1], [], []>} : vector<16x256xbf16>, vector<256x128xbf16>, vector<16x128xf32> -> vector<16x128xf32>
    %13 = arith.addf %9, %12 : vector<16x128xf32>
    %c0_11 = arith.constant 0 : index
    %c0_12 = arith.constant 0 : index
    %14 = vector.load %arg8[%c0_11, %c0_12] : memref<16x128xf32, #tpu.memory_space<vmem>>, vector<16x128xf32>
    tpu.vector_store %arg8[%c0_11, %c0_12], %13 {strides = array<i32>} : memref<16x128xf32, #tpu.memory_space<vmem>>, vector<16x128xf32>,
    %c0_i32_13 = arith.constant 0 : i32
    %15 = arith.cmpi eq, %arg2, %c0_i32_13 : i32
    %16 = arith.extui %15 : i1 to i32
    %c0_i32_14 = arith.constant 0 : i32
    %17 = arith.cmpi ne, %16, %c0_i32_14 : i32
    scf.if %17 {
      %c0_15 = arith.constant 0 : index
      %c0_16 = arith.constant 0 : index
      %18 = vector.load %arg8[%c0_15, %c0_16] : memref<16x128xf32, #tpu.memory_space<vmem>>, vector<16x128xf32>
      %c0_17 = arith.constant 0 : index
      %c0_18 = arith.constant 0 : index
      %19 = vector.load %arg7[%c0_17, %c0_18] : memref<1x128xf32, #tpu.memory_space<vmem>>, vector<1x128xf32>
      %20 = vector.broadcast %19 : vector<1x128xf32> to vector<16x128xf32>
      %21 = arith.addf %18, %20 : vector<16x128xf32>
      %c0_19 = arith.constant 0 : index
      %c0_20 = arith.constant 0 : index
      %22 = vector.load %arg8[%c0_19, %c0_20] : memref<16x128xf32, #tpu.memory_space<vmem>>, vector<16x128xf32>
      tpu.vector_store %arg8[%c0_19, %c0_20], %21 {strides = array<i32>} : memref<16x128xf32, #tpu.memory_space<vmem>>, vector<16x128xf32>,
    } else {
    }
    return
  }
  func.func @transform_0(%arg0: i32, %arg1: i32, %arg2: i32) -> (i32, i32) {
    %c0_i32 = arith.constant 0 : i32
    %c0_i32_0 = arith.constant 0 : i32
    return %arg0, %c0_i32 : i32, i32
  }
  func.func @transform_1(%arg0: i32, %arg1: i32, %arg2: i32) -> (i32, i32) {
    %c0_i32 = arith.constant 0 : i32
    %c0_i32_0 = arith.constant 0 : i32
    return %c0_i32, %arg2 : i32, i32
  }
  func.func @transform_2(%arg0: i32, %arg1: i32, %arg2: i32) -> (i32, i32) {
    %c0_i32 = arith.constant 0 : i32
    %c0_i32_0 = arith.constant 0 : i32
    return %c0_i32, %arg2 : i32, i32
  }
  func.func @transform_3(%arg0: i32, %arg1: i32, %arg2: i32) -> (i32, i32) {
    %c0_i32 = arith.constant 0 : i32
    return %arg2, %arg1 : i32, i32
  }
  func.func @transform_4(%arg0: i32, %arg1: i32, %arg2: i32) -> (i32, i32) {
    %c0_i32 = arith.constant 0 : i32
    %c0_i32_0 = arith.constant 0 : i32
    return %c0_i32, %arg1 : i32, i32
  }
  func.func @transform_5(%arg0: i32, %arg1: i32, %arg2: i32) -> (i32, i32) {
    %c0_i32 = arith.constant 0 : i32
    return %arg0, %arg1 : i32, i32
  }
}

</mosaic_0001>

<bundles_post_ra>
// kernel: tpu_custom_call.1
= control target key start
LH: loop header
LB: loop body
LE: loop exit
PB: predicated region body
PF: predicated region fallthrough
CT: control target
= control target key end

     0   :  { %10 = vsyncpa [#allocation3], 0  ;;  %s839_s0 = inlined_call_operand.hbm [shape: bf16[16,256], index: 0, kind: input, shape index: {}]   ;;  %s840_s1 = inlined_call_operand.hbm [shape: bf16[256,256], index: 1, kind: input, shape index: {}]   ;;  %s841_s2 = inlined_call_operand.vmem [shape: f32[1,256], index: 2, kind: input, shape index: {}]   ;;  %s842_s3 = inlined_call_operand.hbm [shape: bf16[256,128], index: 3, kind: input, shape index: {}]   ;;  %s843_s4 = inlined_call_operand.vmem [shape: f32[1,128], index: 4, kind: input, shape index: {}]   ;;  %s844_s5 = inlined_call_operand.hbm [shape: f32[16,128], index: 5, kind: output, shape index: {}]  }
   0x1   :  { %11 = vsyncpa [#allocation6], 0 }
   0x2   :  { %12 = vsyncpa [#allocation4], 0  ;;  %s774_s18 = smov [#allocation5]   ;;  %s775_s20 = smov [#allocation2]  }
   0x3   :  { %s30_s19 = sshll.u32 %s774_s18, 4  ;;  %s18_s21 = sshll.u32 %s775_s20, 4  ;;  %s31_s19 = int_to_ptr.vmem [resolvable:$true] %s30_s19  ;;  %s19_s21 = int_to_ptr.vmem [resolvable:$true] %s18_s21 }
   0x4   :  { %s696_s22 = scalar_lea.vmem %s31_s19, 4096  ;;  %p701_p1 = scmp.lt.s32.totalorder %s31_s19, %s31_s19 }
   0x5   :  { %p697_p0 = scmp.ne.s32.totalorder %s31_s19, %s696_s22  ;;  %p702_p2 = scmp.lt.s32.totalorder %s696_s22, %s696_s22 }
   0x7   :  { %p703_p3 = por %p702_p2, %p701_p1 }
   0x9   :  { %p704_p4 = pnand %p703_p3, %p697_p0 }
   0xb   :  { %707 = shalt.err (!%p704_p4)
}
   0xc   :  { %s776_s23 = smov 128   ;;  %s777_s24 = smov 8  }
   0xd   :  { %36 = dma.hbm_to_vmem [thread:$0]  %s840_s1, 4096, %s31_s19, [#allocation6], %s776_s23, %s776_s23, %s777_s24  }
   0xe   :  { %s716_s27 = scalar_lea.vmem %s19_s21, 256  ;;  %p721_p6 = scmp.lt.s32.totalorder %s19_s21, %s19_s21 }
   0xf   :  { %p717_p5 = scmp.ne.s32.totalorder %s19_s21, %s716_s27  ;;  %p722_p7 = scmp.lt.s32.totalorder %s716_s27, %s716_s27 }
  0x11   :  { %p723_p8 = por %p722_p7, %p721_p6 }
  0x13   :  { %p724_p9 = pnand %p723_p8, %p717_p5 }
  0x15   :  { %727 = shalt.err (!%p724_p9)
}
  0x16   :  { %24 = dma.hbm_to_vmem [thread:$0]  %s839_s0, 256, %s19_s21, [#allocation3], %s776_s23, %s776_s23, %s777_s24  }
  0x17   :  { %s778_s30 = smov [#allocation7]  }
  0x18   :  { %s44_s6 = sshll.u32 %s778_s30, 4  ;;  %s45_s6 = int_to_ptr.vmem [resolvable:$true] %s44_s6 }
  0x19   :  { %s736_s7 = scalar_lea.vmem %s45_s6, 2048  ;;  %p741_p11 = scmp.lt.s32.totalorder %s45_s6, %s45_s6 }
  0x1a   :  { %p737_p10 = scmp.ne.s32.totalorder %s45_s6, %s736_s7  ;;  %p742_p12 = scmp.lt.s32.totalorder %s736_s7, %s736_s7 }
  0x1c   :  { %p743_p13 = por %p742_p12, %p741_p11 }
  0x1e   :  { %p744_p0 = pnand %p743_p13, %p737_p10 }
  0x20   :  { %747 = shalt.err (!%p744_p0)
}
  0x21   :  { %s779_s1 = smov 64   ;;  %s780_s8 = smov 4  }
  0x22   :  { %50 = dma.hbm_to_vmem [thread:$0]  %s842_s3, 2048, %s45_s6, [#allocation6], %s779_s1, %s779_s1, %s780_s8  }
  0x23   :  { %768 = dma.done.wait [#allocation3], 256  }
  0x24   :  { %769 = vsyncadd [#allocation3], 4294967040 }
  0x25   :  { %770 = dma.done.wait [#allocation6], 6144  }
  0x26   :  { %771 = vsyncadd [#allocation6], 4294961152  ;;  %v621_v0 = vld [vmem:[#allocation5 + $0x74] ss:$8 sps:$4 sm:$0xff]   ;;  %v623_v1 = vld [vmem:[#allocation5 + $0x70] ss:$8 sps:$4 sm:$0xff]   ;;  %v105_v50 = vlaneseq }
  0x27   :  { %285 = vmatprep.subr.bf16.mxu0 %v621_v0  ;;  %v624_v2 = vld [vmem:[#allocation5 + $0x64] ss:$8 sps:$4 sm:$0xff]   ;;  %v626_v3 = vld [vmem:[#allocation5 + $0x60] ss:$8 sps:$4 sm:$0xff]   ;;  %v627_v4 = vld [vmem:[#allocation5 + $0x54] ss:$8 sps:$4 sm:$0xff]  }
  0x28   :  { %286 = vmatpush1.bf16.msra.mxu0 %v623_v1  ;;  %v629_v5 = vld [vmem:[#allocation5 + $0x50] ss:$8 sps:$4 sm:$0xff]   ;;  %v630_v6 = vld [vmem:[#allocation5 + $0x44] ss:$8 sps:$4 sm:$0xff]   ;;  %v632_v7 = vld [vmem:[#allocation5 + $0x40] ss:$8 sps:$4 sm:$0xff]  }
  0x29   :  { %287 = vmatprep.subr.bf16.mxu0 %v624_v2  ;;  %v633_v8 = vld [vmem:[#allocation5 + $0x34] ss:$8 sps:$4 sm:$0xff]   ;;  %v635_v9 = vld [vmem:[#allocation5 + $0x30] ss:$8 sps:$4 sm:$0xff]   ;;  %v636_v10 = vld [vmem:[#allocation5 + $0x24] ss:$8 sps:$4 sm:$0xff]  }
  0x2a   :  { %v638_v11 = vld [vmem:[#allocation5 + $0x20] ss:$8 sps:$4 sm:$0xff]   ;;  %v639_v12 = vld [vmem:[#allocation5 + $0x14] ss:$8 sps:$4 sm:$0xff]   ;;  %v641_v13 = vld [vmem:[#allocation5 + $0x10] ss:$8 sps:$4 sm:$0xff]  }
  0x2b   :  { %v642_v14 = vld [vmem:[#allocation5 + $0x4] ss:$8 sps:$4 sm:$0xff]   ;;  %v671_v15 = vld [vmem:[#allocation2 + $0x4] ss:$8 sps:$4 sm:$0xff]   ;;  %v644_v18 = vld [vmem:[#allocation5] ss:$8 sps:$4 sm:$0xff]  }
  0x2c   :  { %288 = vmatpush1.bf16.msra.mxu0 %v626_v3  ;;  %v672_v16 = vld [vmem:[#allocation7 + $0x78] sm:$0xff]   ;;  %317 = vmatprep.mubr.bf16.mxu0 %v671_v15  ;;  %v674_v19 = vld [vmem:[#allocation7 + $0x70] sm:$0xff]   ;;  %v676_v21 = vld [vmem:[#allocation7 + $0x68] sm:$0xff]   ;;  %v106_v51 = vshrl.u32 %v105_v50, 7 }
  0x2d   :  { %289 = vmatprep.subr.bf16.mxu0 %v627_v4  ;;  %v673_v17 = vld [vmem:[#allocation7 + $0x38] sm:$0xff]   ;;  %590 = vmatprep.subr.bf16.mxu1 %v672_v16  ;;  %v675_v20 = vld [vmem:[#allocation7 + $0x30] sm:$0xff]   ;;  %v677_v24 = vld [vmem:[#allocation7 + $0x28] sm:$0xff]  }
  0x2e   :  { %591 = vmatpush3.bf16.msra.mxu1 %v673_v17  ;;  %v645_v22 = vld [vmem:[#allocation5 + $0xf4] ss:$8 sps:$4 sm:$0xff]   ;;  %v647_v23 = vld [vmem:[#allocation5 + $0xf0] ss:$8 sps:$4 sm:$0xff]   ;;  %v678_v25 = vld [vmem:[#allocation7 + $0x60] sm:$0xff]   ;;  %v111_v52 = vsub.s32 1, %v106_v51 }
  0x2f   :  { %592 = vmatprep.subr.bf16.mxu1 %v674_v19  ;;  %v648_v26 = vld [vmem:[#allocation5 + $0xe4] ss:$8 sps:$4 sm:$0xff]   ;;  %v650_v28 = vld [vmem:[#allocation5 + $0xe0] ss:$8 sps:$4 sm:$0xff]   ;;  %v680_v29 = vld [vmem:[#allocation7 + $0x58] sm:$0xff]   ;;  %v107_v53 = vsub.s32 0, %v106_v51 }
  0x30   :  { %290 = vmatpush1.bf16.msra.mxu0 %v629_v5  ;;  %v679_v27 = vld [vmem:[#allocation7 + $0x20] sm:$0xff]   ;;  %v651_v30 = vld [vmem:[#allocation5 + $0xd4] ss:$8 sps:$4 sm:$0xff]   ;;  %v653_v32 = vld [vmem:[#allocation5 + $0xd0] ss:$8 sps:$4 sm:$0xff]  }
  0x31   :  { %291 = vmatprep.subr.bf16.mxu0 %v630_v6  ;;  %v681_v31 = vld [vmem:[#allocation7 + $0x18] sm:$0xff]   ;;  %v654_v33 = vld [vmem:[#allocation5 + $0xc4] ss:$8 sps:$4 sm:$0xff]   ;;  %v656_v34 = vld [vmem:[#allocation5 + $0xc0] ss:$8 sps:$4 sm:$0xff]  }
  0x32   :  { %593 = vmatpush3.bf16.msra.mxu1 %v675_v20  ;;  %v657_v35 = vld [vmem:[#allocation5 + $0xb4] ss:$8 sps:$4 sm:$0xff]   ;;  %v659_v36 = vld [vmem:[#allocation5 + $0xb0] ss:$8 sps:$4 sm:$0xff]   ;;  %v660_v37 = vld [vmem:[#allocation5 + $0xa4] ss:$8 sps:$4 sm:$0xff]  }
  0x33   :  { %594 = vmatprep.subr.bf16.mxu1 %v676_v21  ;;  %v662_v38 = vld [vmem:[#allocation5 + $0xa0] ss:$8 sps:$4 sm:$0xff]   ;;  %v663_v39 = vld [vmem:[#allocation5 + $0x94] ss:$8 sps:$4 sm:$0xff]   ;;  %v665_v40 = vld [vmem:[#allocation5 + $0x90] ss:$8 sps:$4 sm:$0xff]  }
  0x34   :  { %292 = vmatpush1.bf16.msra.mxu0 %v632_v7  ;;  %v666_v41 = vld [vmem:[#allocation5 + $0x84] ss:$8 sps:$4 sm:$0xff]   ;;  %v668_v42 = vld [vmem:[#allocation5 + $0x80] ss:$8 sps:$4 sm:$0xff]   ;;  %v669_v43 = vld [vmem:[#allocation2] ss:$8 sps:$4 sm:$0xff]  }
  0x35   :  { %293 = vmatprep.subr.bf16.mxu0 %v633_v8  ;;  %v682_v44 = vld [vmem:[#allocation7 + $0x50] sm:$0xff]   ;;  %v684_v46 = vld [vmem:[#allocation7 + $0x48] sm:$0xff]   ;;  %v686_v48 = vld [vmem:[#allocation7 + $0x40] sm:$0xff]  }
  0x36   :  { %595 = vmatpush3.bf16.msra.mxu1 %v677_v24  ;;  %v683_v45 = vld [vmem:[#allocation7 + $0x10] sm:$0xff]   ;;  %v685_v47 = vld [vmem:[#allocation7 + $0x8] sm:$0xff]   ;;  %v687_v49 = vld [vmem:[#allocation7] sm:$0xff]  }
  0x37   :  { %596 = vmatprep.subr.bf16.mxu1 %v678_v25  ;;  %v103_v55 = vld [vmem:[%s841_s2] sm:$0x3]  ;;  %s781_s2 = smov [#allocation8]  }
  0x38   :  { %294 = vmatpush1.bf16.msra.mxu0 %v635_v9  ;;  %v112_v57 = vrot.slane %v103_v55, %v111_v52  ;;  %v108_v58 = vrot.slane %v103_v55, %v107_v53  ;;  %v589_v7 = vld [vmem:[%s843_s4] ss:$0 sm:$0xff]  ;;  %s526_s13 = sshll.u32 %s781_s2, 4  ;;  %s527_s13 = int_to_ptr.vmem [resolvable:$true] %s526_s13 }
  0x39   :  { %295 = vmatprep.subr.bf16.mxu0 %v636_v10  ;;  %s748_s14 = scalar_lea.vmem %s527_s13, 256  ;;  %p753_p2 = scmp.lt.s32.totalorder %s527_s13, %s527_s13 }
  0x3a   :  { %597 = vmatpush3.bf16.msra.mxu1 %v679_v27  ;;  %p749_p1 = scmp.ne.s32.totalorder %s527_s13, %s748_s14  ;;  %p754_p3 = scmp.lt.s32.totalorder %s748_s14, %s748_s14 }
  0x3b   :  { %598 = vmatprep.subr.bf16.mxu1 %v680_v29 }
  0x3c   :  { %296 = vmatpush1.bf16.msra.mxu0 %v638_v11  ;;  %p755_p4 = por %p754_p3, %p753_p2 }
  0x3d   :  { %297 = vmatprep.subr.bf16.mxu0 %v639_v12 }
  0x3e   :  { %599 = vmatpush3.bf16.msra.mxu1 %v681_v31  ;;  %p756_p5 = pnand %p755_p4, %p749_p1 }
  0x3f   :  { %600 = vmatprep.subr.bf16.mxu1 %v682_v44 }
  0x40   :  { %298 = vmatpush1.bf16.msra.mxu0 %v641_v13 }
  0x41   :  { %299 = vmatprep.subr.bf16.mxu0 %v642_v14 }
  0x42   :  { %601 = vmatpush3.bf16.msra.mxu1 %v683_v45 }
  0x43   :  { %602 = vmatprep.subr.bf16.mxu1 %v684_v46 }
  0x44   :  { %300 = vmatpush1.bf16.msra.mxu0 %v644_v18 }
  0x45   :  { %301 = vmatprep.subr.bf16.mxu0 %v645_v22 }
  0x46   :  { %603 = vmatpush3.bf16.msra.mxu1 %v685_v47 }
  0x47   :  { %604 = vmatprep.subr.bf16.mxu1 %v686_v48 }
  0x48   :  { %302 = vmatpush2.bf16.msra.mxu0 %v647_v23 }
  0x49   :  { %303 = vmatprep.subr.bf16.mxu0 %v648_v26 }
  0x4a   :  { %605 = vmatpush3.bf16.msra.mxu1 %v687_v49 }
  0x4c   :  { %304 = vmatpush2.bf16.msra.mxu0 %v650_v28 }
  0x4d   :  { %305 = vmatprep.subr.bf16.mxu0 %v651_v30 }
  0x50   :  { %306 = vmatpush2.bf16.msra.mxu0 %v653_v32 }
  0x51   :  { %307 = vmatprep.subr.bf16.mxu0 %v654_v33 }
  0x54   :  { %308 = vmatpush2.bf16.msra.mxu0 %v656_v34 }
  0x55   :  { %309 = vmatprep.subr.bf16.mxu0 %v657_v35 }
  0x58   :  { %310 = vmatpush2.bf16.msra.mxu0 %v659_v36 }
  0x59   :  { %311 = vmatprep.subr.bf16.mxu0 %v660_v37 }
  0x5c   :  { %312 = vmatpush2.bf16.msra.mxu0 %v662_v38 }
  0x5d   :  { %313 = vmatprep.subr.bf16.mxu0 %v663_v39 }
  0x60   :  { %314 = vmatpush2.bf16.msra.mxu0 %v665_v40 }
  0x61   :  { %315 = vmatprep.subr.bf16.mxu0 %v666_v41 }
  0x64   :  { %316 = vmatpush2.bf16.msra.mxu0 %v668_v42 }
  0x67   :  { %318 = vmatmul.mubr.bf16.vlgmr.msra.gmra.mxu0 %v669_v43 }
 0x127   :  { %v319_v54 = vpop.f32.mrf.mxu0 }
 0x128   :  { %v320_v0 = vadd.f32 %v319_v54, %v108_v58 }
 0x129   :  { %v321_v56 = vpop.f32.mrf.mxu0 }
 0x12a   :  { %v322_v62 = vadd.f32 %v321_v56, %v112_v57 }
 0x12b   :  { %v323_v59 = vpop.f32.mrf.mxu0 }
 0x12c   :  { %v324_v60 = vadd.f32 %v323_v59, %v108_v58 }
 0x12d   :  { %v325_v61 = vpop.f32.mrf.mxu0 }
 0x12e   :  { %v326_v63 = vadd.f32 %v325_v61, %v112_v57  ;;  %v330_v2 = vpack.c.bf16 %v324_v60, %v320_v0 }
 0x130   :  { %v331_v1 = vpack.c.bf16 %v326_v63, %v322_v62 }
 0x132   :  { %492 = vmatprep.mubr.bf16.mxu1 %v331_v1 }
 0x133   :  { %493 = vmatmul.mubr.bf16.vlgmr.msra.gmra.mxu1 %v330_v2 }
 0x1f3   :  { %v606_v3 = vpop.f32.mrf.mxu1 }
 0x1f5   :  { %v607_v4 = vpop.f32.mrf.mxu1 }
 0x1f6   :  { %v608_v5 = vadd.f32 %v607_v4, %v606_v3 }
 0x1f7   :  { %v609_v6 = vpop.f32.mrf.mxu1 }
 0x1f8   :  { %v517_v10 = vadd.f32 %v608_v5, %v589_v7 }
 0x1f9   :  { %v610_v8 = vpop.f32.mrf.mxu1 }
 0x1fa   :  { %v611_v9 = vadd.f32 %v610_v8, %v609_v6  ;;  %519 = vst [vmem:[#allocation8] sm:$0xff] %v517_v10 }
 0x1fc   :  { %v518_v11 = vadd.f32 %v611_v9, %v589_v7 }
 0x1fe   :  { %520 = vst [vmem:[#allocation8 + $0x8] sm:$0xff] %v518_v11 }
 0x1ff   :  { %759 = shalt.err (!%p756_p5)
}
 0x200   :  { %532 = dma.vmem_to_hbm [thread:$0]  %s527_s13, 256, %s844_s5, [#allocation4], %s776_s23, %s776_s23, %s777_s24  }
 0x201   :  { %772 = dma.done.wait [#allocation4], 256  }
 0x202   :  { %773 = vsyncadd [#allocation4], 4294967040 }
 0x203   :  { %536 = vsyncpa [#allocation3], 1 }
 0x204   :  { %537 = vsyncpa [#allocation6], 1 }
 0x205   :  { %538 = vsyncpa [#allocation4], 1 }

</bundles_post_ra>
